<compile_context>
chip_gen: v6e
topology: v6e:2x2x1
jax: 0.10.0
libtpu: 0.0.40
codegen_flags: <defaults>
</compile_context>

<pallas_src>
import math
import jax
import jax.numpy as jnp
from jax.experimental import pallas as pl
from jax.experimental.pallas import tpu as pltpu

# StdLayerExp defaults
MIN_STD = 0.001
MAX_STD = 2.0
OUT_GAIN = 0.01
LOG_MIN_STD = math.log(MIN_STD)
LOG_MAX_STD = math.log(MAX_STD)

SUBLANE = 8


def _round_up(x, m):
    return ((x + m - 1) // m) * m


def _std_layer_exp_kernel(state_ref, w_ref, b_ref, std_ref):
    # state_ref: (tb, D), w_ref: (D, A), b_ref: (1, A), std_ref: (tb, A)
    pre_std = jnp.dot(state_ref[...], w_ref[...],
                      preferred_element_type=jnp.float32) + b_ref[...]
    std = jnp.exp(jnp.clip(pre_std, LOG_MIN_STD, LOG_MAX_STD))
    std_ref[...] = std.astype(std_ref.dtype)


def std_layer_exp_forward(state, w, b, *, tile_b=2048):
    """std = exp(clamp(state @ w + b, log(MIN_STD), log(MAX_STD))).

    state: (B, D).  w: (D, A) (torch Linear.weight transposed).  b: (A,).
    Returns (B, A) in state's dtype (accumulation / clamp / exp in f32).
    """
    # TODO(synk): state_independent_std=True branch (parameter broadcast) is a
    # trivial repeat outside any kernel; only the default Linear path is here.
    B, D = state.shape
    A = w.shape[1]
    # Bias as a (1, A) row; this reshape is free and could be hoisted to init.
    b2 = b.reshape(1, A)

    # Batch tile: full-dim block for tiny batches, otherwise a big sublane-
    # aligned tile.  Partial last block is handled by Pallas (no wrapper pad).
    if B <= SUBLANE:
        tb = B
    else:
        tb = _round_up(min(tile_b, _round_up(B, SUBLANE)), SUBLANE)
        # Guarantee >= 2 grid steps so the "parallel" axis can shard across
        # v7x's 2 TensorCores; costs one extra ~0.35us step on 1-TC chips.
        if pl.cdiv(B, tb) < 2:
            tb = max(SUBLANE, _round_up(pl.cdiv(B, 2), SUBLANE))
    grid = (pl.cdiv(B, tb),)

    cost = pl.CostEstimate(
        flops=2 * B * D * A,
        transcendentals=B * A,
        bytes_accessed=(B * D * state.dtype.itemsize
                        + D * A * w.dtype.itemsize
                        + A * b.dtype.itemsize
                        + B * A * state.dtype.itemsize),
    )

    return pl.pallas_call(
        _std_layer_exp_kernel,
        out_shape=jax.ShapeDtypeStruct((B, A), state.dtype),
        grid=grid,
        in_specs=[
            pl.BlockSpec((tb, D), lambda i: (i, 0)),   # state: tiled over B
            pl.BlockSpec((D, A), lambda i: (0, 0)),    # weights: VMEM-resident
            pl.BlockSpec((1, A), lambda i: (0, 0)),    # bias: VMEM-resident
        ],
        out_specs=pl.BlockSpec((tb, A), lambda i: (i, 0)),
        compiler_params=pltpu.CompilerParams(
            dimension_semantics=("parallel",)),
        cost_estimate=cost,
    )(state, w, b2)


def xavier_uniform(key, fan_in, fan_out, gain):
    bound = gain * math.sqrt(6.0 / (fan_in + fan_out))
    return jax.random.uniform(key, (fan_in, fan_out), jnp.float32, -bound, bound)


def _reference(state, w, b):
    pre_std = state.astype(jnp.float32) @ w.astype(jnp.float32) + b.reshape(1, -1)
    return jnp.exp(jnp.clip(pre_std, LOG_MIN_STD, LOG_MAX_STD))


if __name__ == "__main__":
    key = jax.random.PRNGKey(0)
    k_state, k_w, k_state2 = jax.random.split(key, 3)

    # num_inputs=32, num_outputs=8 (small shapes consistent with the module)
    B, D, A = 8, 32, 8

    state = jax.random.normal(k_state, (B, D), dtype=jnp.float32)
    # xavier_uniform_(gain=0.01) on the (A, D) torch weight == same bound on (D, A)
    w = xavier_uniform(k_w, D, A, OUT_GAIN)
    b = jnp.zeros((A,), dtype=jnp.float32)

    # 1) tiny batch: single full-dim block.
    std = std_layer_exp_forward(state, w, b)
    jax.block_until_ready(std)
    assert std.shape == (B, A)
    assert jnp.allclose(std, _reference(state, w, b), atol=1e-5)

    # 2) B=20 with default tile: forced 2-step grid + partial last block
    #    (exercises the v7x 2-TC split path and OOB-dropped writes).
    B2 = 20
    state2 = jax.random.normal(k_state2, (B2, D), dtype=jnp.float32)
    std2 = std_layer_exp_forward(state2, w, b)
    jax.block_until_ready(std2)
    assert std2.shape == (B2, A)
    assert jnp.allclose(std2, _reference(state2, w, b), atol=1e-5)

    # 3) same batch with a tiny tile: multi-step pipeline + partial block.
    std3 = std_layer_exp_forward(state2, w, b, tile_b=8)
    jax.block_until_ready(std3)
    assert std3.shape == (B2, A)
    assert jnp.allclose(std3, _reference(state2, w, b), atol=1e-5)

    print("KERNEL_OK")
</pallas_src>

<mosaic_0001>
module attributes {stable_mosaic.version = 11 : i64} {
  func.func @_std_layer_exp_kernel(%arg0: i32, %arg1: memref<8x32xf32, #tpu.memory_space<vmem>>, %arg2: memref<32x8xf32, #tpu.memory_space<vmem>>, %arg3: memref<1x8xf32, #tpu.memory_space<vmem>>, %arg4: memref<8x8xf32, #tpu.memory_space<vmem>>) attributes {dimension_semantics = [#tpu.dimension_semantics<parallel>], iteration_bounds = array<i64: 1>, scalar_prefetch = 0 : i64, scratch_operands = 0 : i64, tpu.core_type = #tpu.core_type<tc>, window_params = [{transform_indices = @transform_0, window_bounds = array<i64: 8, 32>}, {pipeline_mode = #tpu.pipeline_mode<synchronous>, transform_indices = @transform_1, window_bounds = array<i64: 32, 8>}, {pipeline_mode = #tpu.pipeline_mode<synchronous>, transform_indices = @transform_2, window_bounds = array<i64: 1, 8>}, {transform_indices = @transform_3, window_bounds = array<i64: 8, 8>}]} {
    %c0 = arith.constant 0 : index
    %c0_0 = arith.constant 0 : index
    %0 = vector.load %arg1[%c0, %c0_0] : memref<8x32xf32, #tpu.memory_space<vmem>>, vector<8x32xf32>
    %c0_1 = arith.constant 0 : index
    %c0_2 = arith.constant 0 : index
    %1 = vector.load %arg2[%c0_1, %c0_2] : memref<32x8xf32, #tpu.memory_space<vmem>>, vector<32x8xf32>
    %cst = arith.constant dense<0.000000e+00> : vector<8x8xf32>
    %2 = tpu.matmul %0, %1, %cst {dimension_numbers = #tpu.dot_dimension_numbers<[1], [0], [0], [1], [0, 0, 1, 1], [], []>} : vector<8x32xf32>, vector<32x8xf32>, vector<8x8xf32> -> vector<8x8xf32>
    %c0_3 = arith.constant 0 : index
    %c0_4 = arith.constant 0 : index
    %3 = vector.load %arg3[%c0_3, %c0_4] : memref<1x8xf32, #tpu.memory_space<vmem>>, vector<1x8xf32>
    %4 = vector.broadcast %3 : vector<1x8xf32> to vector<8x8xf32>
    %5 = arith.addf %2, %4 : vector<8x8xf32>
    %cst_5 = arith.constant -6.90775537 : f32
    %cst_6 = arith.constant 0.693147182 : f32
    %6 = vector.broadcast %cst_5 : f32 to vector<8x8xf32>
    %7 = arith.maximumf %6, %5 : vector<8x8xf32>
    %8 = vector.broadcast %cst_6 : f32 to vector<8x8xf32>
    %9 = arith.minimumf %8, %7 : vector<8x8xf32>
    %10 = math.exp %9 : vector<8x8xf32>
    %c0_7 = arith.constant 0 : index
    %c0_8 = arith.constant 0 : index
    %11 = vector.load %arg4[%c0_7, %c0_8] : memref<8x8xf32, #tpu.memory_space<vmem>>, vector<8x8xf32>
    tpu.vector_store %arg4[%c0_7, %c0_8], %10 {strides = array<i32>} : memref<8x8xf32, #tpu.memory_space<vmem>>, vector<8x8xf32>,
    return
  }
  func.func @transform_0(%arg0: i32) -> (i32, i32) {
    %c0_i32 = arith.constant 0 : i32
    %c0_i32_0 = arith.constant 0 : i32
    return %arg0, %c0_i32 : i32, i32
  }
  func.func @transform_1(%arg0: i32) -> (i32, i32) {
    %c0_i32 = arith.constant 0 : i32
    %c0_i32_0 = arith.constant 0 : i32
    %c0_i32_1 = arith.constant 0 : i32
    return %c0_i32, %c0_i32_0 : i32, i32
  }
  func.func @transform_2(%arg0: i32) -> (i32, i32) {
    %c0_i32 = arith.constant 0 : i32
    %c0_i32_0 = arith.constant 0 : i32
    %c0_i32_1 = arith.constant 0 : i32
    return %c0_i32, %c0_i32_0 : i32, i32
  }
  func.func @transform_3(%arg0: i32) -> (i32, i32) {
    %c0_i32 = arith.constant 0 : i32
    %c0_i32_0 = arith.constant 0 : i32
    return %arg0, %c0_i32 : i32, i32
  }
}

</mosaic_0001>

<bundles_post_ra>
// kernel: tpu_custom_call.1
= control target key start
LH: loop header
LB: loop body
LE: loop exit
PB: predicated region body
PF: predicated region fallthrough
CT: control target
= control target key end

     0   :  { %v166_v1 = vmov 0.0   ;;  %vm167_vm0 = vmmov 0   ;;  %s210_s0 = inlined_call_operand.vmem [shape: f32[8,32], index: 0, kind: input, shape index: {}]   ;;  %s211_s1 = inlined_call_operand.vmem [shape: f32[32,8], index: 1, kind: input, shape index: {}]   ;;  %s212_s2 = inlined_call_operand.vmem [shape: f32[1,8], index: 2, kind: input, shape index: {}]   ;;  %s213_s3 = inlined_call_operand.hbm [shape: f32[8,8], index: 3, kind: output, shape index: {}]  }
   0x1   :  { %v19_v0 = vld [vmem:[%s211_s1 + $0x18] sm:$0xff]  ;;  %128 = vmatprep.subr.mxu0 %v166_v1  ;;  %v18_v2 = vld [vmem:[%s211_s1 + $0x10] sm:$0xff]  ;;  %136 = vmatprep.mubr.msk.f32.mxu0 %vm167_vm0, %v166_v1 }
   0x2   :  { %129 = vmatpush3.msra.mxu0 %v19_v0 }
   0x3   :  { %8 = vsyncpa [#allocation3], 0  ;;  %130 = vmatprep.subr.mxu0 %v166_v1  ;;  %v17_v3 = vld [vmem:[%s211_s1 + $0x8] sm:$0xff]  ;;  %v16_v4 = vld [vmem:[%s211_s1] sm:$0xff]  ;;  %vm27_vm1 = vcmask 261120   ;;  %s168_s1 = smov [#allocation2]  }
   0x4   :  { %131 = vmatpush3.msra.mxu0 %v18_v2  ;;  %v15_v5 = vld [vmem:[%s210_s0] sm:$0xff]  ;;  %s113_s24 = sshll.u32 %s168_s1, 4  ;;  %vm105_vm2 = vcmask 64512   ;;  %s114_s24 = int_to_ptr.vmem [resolvable:$true] %s113_s24 }
   0x5   :  { %132 = vmatprep.subr.mxu0 %v166_v1  ;;  %v121_v6 = vld [vmem:[%s212_s2] ss:$0 sm:$0xff]  ;;  %s144_s0 = scalar_lea.vmem %s114_s24, 128  ;;  %p149_p1 = scmp.lt.s32.totalorder %s114_s24, %s114_s24 }
   0x6   :  { %133 = vmatpush3.msra.mxu0 %v17_v3  ;;  %p145_p0 = scmp.ne.s32.totalorder %s114_s24, %s144_s0  ;;  %p150_p2 = scmp.lt.s32.totalorder %s144_s0, %s144_s0 }
   0x7   :  { %134 = vmatprep.subr.mxu0 %v166_v1 }
   0x8   :  { %135 = vmatpush3.msra.mxu0 %v16_v4  ;;  %p151_p3 = por %p150_p2, %p149_p1 }
   0x9   :  { %137 = vmatmul.mubr.msk.f32.vlgmr.msra.gmra.mxu0 %vm27_vm1, %v15_v5 }
   0xa   :  { %p152_p4 = pnand %p151_p3, %p145_p0 }
  0xc9   :  { %v97_v7 = vpop.f32.mrf.mxu0 }
  0xca   :  { %v98_v8 = vadd.f32 %v121_v6, %v97_v7 }
  0xcb   :  { %v138_v9 = vpop.f32.mrf.mxu0 }
  0xcc   :  { %v101_v10 = vmax.f32 %v98_v8, -6.9077554 }
  0xce   :  { %v102_v11 = vmin.f32 %v101_v10, 0.6931472 }
  0xd0   :  { %v103_v12 = vmul.f32 1.442695, %v102_v11 }
  0xd2   :  { %142 = vpow2.f32 %v103_v12 }
  0xdf   :  { %v143_v13 = vpop.eup %142 }
  0xe0   :  { %106 = vst.msk [vmem:[#allocation2] sm:$0xff] %vm105_vm2, %v143_v13 }
  0xe1   :  { %155 = shalt.err (!%p152_p4)
}
  0xe2   :  { %116 = dma.vmem_to_hbm [thread:$0]  %s114_s24, 128, %s213_s3, [#allocation3]  }
  0xe3   :  { %164 = dma.done.wait [#allocation3], 128  }
  0xe4   :  { %165 = vsyncadd [#allocation3], 4294967168 }
  0xe5   :  { %120 = vsyncpa [#allocation3], 1 }

</bundles_post_ra>
